<compile_context>
chip_gen: v7x
topology: tpu7x:2x2x1
jax: 0.10.0
libtpu: 0.0.40
codegen_flags: <defaults>
</compile_context>

<pallas_src>
import math

import jax
import jax.numpy as jnp
from jax.experimental import pallas as pl
from jax.experimental.pallas import tpu as pltpu


_FEATS = 8                 # 4 rot + 3 trans + 1 zero pad  (power-of-two packing)
_PACK = 128 // _FEATS      # 16 batch entries per 128-lane row
_MAX_BLOCK_ROWS = 256      # 256 x 128 x 4B = 128 KiB per input block per buffer


def _weighted_l1_kernel(w_ref, pred_ref, tgt_ref, out_ref, acc_ref):
    i = pl.program_id(0)

    @pl.when(i == 0)
    def _init():
        acc_ref[0] = jnp.float32(0.0)

    # |pred - target| weighted per lane by [a,a,a,a,b,b,b,0] (tiled to 128 lanes),
    # reduced to a scalar and accumulated across grid steps.
    diff = jnp.abs(pred_ref[...] - tgt_ref[...])
    acc_ref[0] += jnp.sum(diff * w_ref[...])

    @pl.when(i == pl.num_programs(0) - 1)
    def _finalize():
        out_ref[0, 0] = acc_ref[0]


def _pack(rot, trans, total_rows):
    """Pack (B,4) rot and (B,3) trans into a lane-dense (total_rows, 128) f32 buffer."""
    B = rot.shape[0]
    buf = jnp.zeros((total_rows * _PACK, _FEATS), dtype=jnp.float32)
    buf = buf.at[:B, :4].set(rot.astype(jnp.float32))
    buf = buf.at[:B, 4:7].set(trans.astype(jnp.float32))
    return buf.reshape(total_rows, 128)


def l1_pose_loss(pred, target, alpha=0.7, beta=0.3):
    """Pallas equivalent of Loss(mode='L1', reduction='sum', alpha, beta)."""
    rot, trans = pred
    gt_r, gt_t = target
    B = rot.shape[0]

    # --- static layout sizing -------------------------------------------------
    rows = max(1, math.ceil(B / _PACK))
    rows = math.ceil(rows / 8) * 8                       # sublane-align
    if rows > _MAX_BLOCK_ROWS:
        rows = math.ceil(rows / _MAX_BLOCK_ROWS) * _MAX_BLOCK_ROWS
        block_rows = _MAX_BLOCK_ROWS
    else:
        block_rows = rows
    grid = (rows // block_rows,)

    # --- lane-dense packing (layout plumbing only; padding is zero on both
    #     sides so it contributes nothing to the L1 sum) -----------------------
    pred_buf = _pack(rot, trans, rows)
    tgt_buf = _pack(gt_r, gt_t, rows)

    # per-lane weights: [alpha x4, beta x3, 0] tiled across 128 lanes.
    alpha = jnp.asarray(alpha, jnp.float32)
    beta = jnp.asarray(beta, jnp.float32)
    w8 = jnp.concatenate([jnp.broadcast_to(alpha, (4,)),
                          jnp.broadcast_to(beta, (3,)),
                          jnp.zeros((1,), jnp.float32)])
    w = jnp.tile(w8, _PACK)[None, :]                     # (1, 128)

    n_elems = rows * 128
    cost = pl.CostEstimate(flops=4 * n_elems,
                           transcendentals=0,
                           bytes_accessed=2 * n_elems * 4 + 128 * 4 + 4)

    out = pl.pallas_call(
        _weighted_l1_kernel,
        out_shape=jax.ShapeDtypeStruct((1, 1), jnp.float32),
        grid_spec=pltpu.PrefetchScalarGridSpec(
            num_scalar_prefetch=0,
            grid=grid,
            in_specs=[
                pl.BlockSpec((1, 128), lambda i: (0, 0)),            # weight row
                pl.BlockSpec((block_rows, 128), lambda i: (i, 0)),   # pred
                pl.BlockSpec((block_rows, 128), lambda i: (i, 0)),   # target
            ],
            out_specs=pl.BlockSpec(memory_space=pltpu.MemorySpace.SMEM),
            scratch_shapes=[pltpu.SMEM((1,), jnp.float32)],
        ),
        compiler_params=pltpu.CompilerParams(
            dimension_semantics=("arbitrary",)),
        cost_estimate=cost,
    )(w, pred_buf, tgt_buf)

    return out[0, 0]


def _reference(pred, target, alpha=0.7, beta=0.3):
    rot, trans = pred
    gt_r, gt_t = target
    rot = rot.astype(jnp.float32)
    trans = trans.astype(jnp.float32)
    gt_r = gt_r.astype(jnp.float32)
    gt_t = gt_t.astype(jnp.float32)
    return (jnp.sum(jnp.abs(rot - gt_r)) * alpha
            + jnp.sum(jnp.abs(trans - gt_t)) * beta)


if __name__ == "__main__":
    key = jax.random.PRNGKey(0)

    # Small case consistent with the module (batch of pose predictions).
    k1, k2, k3, k4 = jax.random.split(key, 4)
    B = 2
    rot = jax.random.normal(k1, (B, 4), dtype=jnp.float32)     # predicted quaternion
    trans = jax.random.normal(k2, (B, 3), dtype=jnp.float32)   # predicted translation
    gt_r = jax.random.normal(k3, (B, 4), dtype=jnp.float32)
    gt_t = jax.random.normal(k4, (B, 3), dtype=jnp.float32)

    loss = l1_pose_loss((rot, trans), (gt_r, gt_t), alpha=0.7, beta=0.3)
    loss = jax.block_until_ready(loss)
    ref = _reference((rot, trans), (gt_r, gt_t), alpha=0.7, beta=0.3)
    assert jnp.allclose(loss, ref, rtol=1e-5, atol=1e-5), (loss, ref)

    # Larger batch to exercise the multi-step grid / accumulator path.
    k5, k6, k7, k8 = jax.random.split(jax.random.PRNGKey(1), 4)
    B2 = 4112
    rot2 = jax.random.normal(k5, (B2, 4), dtype=jnp.float32)
    trans2 = jax.random.normal(k6, (B2, 3), dtype=jnp.float32)
    gt_r2 = jax.random.normal(k7, (B2, 4), dtype=jnp.float32)
    gt_t2 = jax.random.normal(k8, (B2, 3), dtype=jnp.float32)

    loss2 = l1_pose_loss((rot2, trans2), (gt_r2, gt_t2), alpha=0.5, beta=0.5)
    loss2 = jax.block_until_ready(loss2)
    ref2 = _reference((rot2, trans2), (gt_r2, gt_t2), alpha=0.5, beta=0.5)
    assert jnp.allclose(loss2, ref2, rtol=1e-4, atol=1e-3), (loss2, ref2)

    print("KERNEL_OK")
</pallas_src>

<mosaic_0001>
module attributes {stable_mosaic.version = 11 : i64} {
  func.func @_weighted_l1_kernel(%arg0: i32, %arg1: memref<1x128xf32, #tpu.memory_space<vmem>>, %arg2: memref<8x128xf32, #tpu.memory_space<vmem>>, %arg3: memref<8x128xf32, #tpu.memory_space<vmem>>, %arg4: memref<1x1xf32, #tpu.memory_space<smem>>, %arg5: memref<1xf32, #tpu.memory_space<smem>>) attributes {dimension_semantics = [#tpu.dimension_semantics<arbitrary>], iteration_bounds = array<i64: 1>, scalar_prefetch = 0 : i64, scratch_operands = 1 : i64, tpu.core_type = #tpu.core_type<tc>, window_params = [{pipeline_mode = #tpu.pipeline_mode<synchronous>, transform_indices = @transform_0, window_bounds = array<i64: 1, 128>}, {transform_indices = @transform_1, window_bounds = array<i64: 8, 128>}, {transform_indices = @transform_2, window_bounds = array<i64: 8, 128>}, {transform_indices = @transform_3, window_bounds = array<i64: 1, 1>}]} {
    %c0_i32 = arith.constant 0 : i32
    %0 = arith.cmpi eq, %arg0, %c0_i32 : i32
    %1 = arith.extui %0 : i1 to i32
    %c0_i32_0 = arith.constant 0 : i32
    %2 = arith.cmpi ne, %1, %c0_i32_0 : i32
    scf.if %2 {
      %cst_10 = arith.constant 0.000000e+00 : f32
      %c0_11 = arith.constant 0 : index
      %20 = memref.load %arg5[%c0_11] : memref<1xf32, #tpu.memory_space<smem>>
      memref.store %cst_10, %arg5[%c0_11] : memref<1xf32, #tpu.memory_space<smem>>
    } else {
    }
    %c0 = arith.constant 0 : index
    %c0_1 = arith.constant 0 : index
    %3 = vector.load %arg2[%c0, %c0_1] : memref<8x128xf32, #tpu.memory_space<vmem>>, vector<8x128xf32>
    %c0_2 = arith.constant 0 : index
    %c0_3 = arith.constant 0 : index
    %4 = vector.load %arg3[%c0_2, %c0_3] : memref<8x128xf32, #tpu.memory_space<vmem>>, vector<8x128xf32>
    %5 = arith.subf %3, %4 : vector<8x128xf32>
    %6 = math.absf %5 : vector<8x128xf32>
    %c0_4 = arith.constant 0 : index
    %7 = memref.load %arg5[%c0_4] : memref<1xf32, #tpu.memory_space<smem>>
    %c0_5 = arith.constant 0 : index
    %c0_6 = arith.constant 0 : index
    %8 = vector.load %arg1[%c0_5, %c0_6] : memref<1x128xf32, #tpu.memory_space<vmem>>, vector<1x128xf32>
    %9 = vector.broadcast %8 : vector<1x128xf32> to vector<8x128xf32>
    %10 = arith.mulf %6, %9 : vector<8x128xf32>
    %11 = vector.shape_cast %10 : vector<8x128xf32> to vector<1x8x128xf32>
    %cst = arith.constant dense<0.000000e+00> : vector<1xf32>
    %12 = vector.multi_reduction <add>, %11, %cst [1, 2] : vector<1x8x128xf32> to vector<1xf32>
    %13 = vector.shape_cast %12 : vector<1xf32> to vector<1x1x1xf32>
    %14 = vector.extract %13[0, 0, 0] : f32 from vector<1x1x1xf32>
    %15 = arith.addf %7, %14 : f32
    %c0_7 = arith.constant 0 : index
    %16 = memref.load %arg5[%c0_7] : memref<1xf32, #tpu.memory_space<smem>>
    memref.store %15, %arg5[%c0_7] : memref<1xf32, #tpu.memory_space<smem>>
    %c0_i32_8 = arith.constant 0 : i32
    %17 = arith.cmpi eq, %arg0, %c0_i32_8 : i32
    %18 = arith.extui %17 : i1 to i32
    %c0_i32_9 = arith.constant 0 : i32
    %19 = arith.cmpi ne, %18, %c0_i32_9 : i32
    scf.if %19 {
      %c0_10 = arith.constant 0 : index
      %20 = memref.load %arg5[%c0_10] : memref<1xf32, #tpu.memory_space<smem>>
      %c0_11 = arith.constant 0 : index
      %c0_12 = arith.constant 0 : index
      %21 = memref.load %arg4[%c0_11, %c0_12] : memref<1x1xf32, #tpu.memory_space<smem>>
      memref.store %20, %arg4[%c0_11, %c0_12] : memref<1x1xf32, #tpu.memory_space<smem>>
    } else {
    }
    return
  }
  func.func @transform_0(%arg0: i32) -> (i32, i32) {
    %c0_i32 = arith.constant 0 : i32
    %c0_i32_0 = arith.constant 0 : i32
    %c0_i32_1 = arith.constant 0 : i32
    return %c0_i32, %c0_i32_0 : i32, i32
  }
  func.func @transform_1(%arg0: i32) -> (i32, i32) {
    %c0_i32 = arith.constant 0 : i32
    %c0_i32_0 = arith.constant 0 : i32
    return %arg0, %c0_i32 : i32, i32
  }
  func.func @transform_2(%arg0: i32) -> (i32, i32) {
    %c0_i32 = arith.constant 0 : i32
    %c0_i32_0 = arith.constant 0 : i32
    return %arg0, %c0_i32 : i32, i32
  }
  func.func @transform_3(%arg0: i32) -> (i32, i32) {
    %c0_i32 = arith.constant 0 : i32
    %c0_i32_0 = arith.constant 0 : i32
    %c0_i32_1 = arith.constant 0 : i32
    return %c0_i32, %c0_i32_0 : i32, i32
  }
}

</mosaic_0001>

<bundles_post_ra>
// kernel: tpu_custom_call.1
= control target key start
LH: loop header
LB: loop body
LE: loop exit
PB: predicated region body
PF: predicated region fallthrough
CT: control target
= control target key end

     0   :  { %8 = vsyncpa [#allocation4], 0  ;;  %s263_s0 = inlined_call_operand.hbm [shape: f32[1,128], index: 0, kind: input, shape index: {}]   ;;  %s264_s1 = inlined_call_operand.hbm [shape: f32[8,128], index: 1, kind: input, shape index: {}]   ;;  %s265_s2 = inlined_call_operand.hbm [shape: f32[8,128], index: 2, kind: input, shape index: {}]   ;;  %s266_s3 = inlined_call_operand.hbm [shape: f32[1,1], index: 3, kind: output, shape index: {}]  }
   0x1   :  { %9 = vsyncpa [#allocation7], 0 }
   0x2   :  { %10 = vsyncpa [#allocation5], 0  ;;  %s191_s12 = smov [#allocation6]   ;;  %s192_s14 = smov [#allocation3]  }
   0x3   :  { %s27_s13 = sshll.u32 %s191_s12, 4  ;;  %s17_s15 = sshll.u32 %s192_s14, 4  ;;  %s28_s13 = int_to_ptr.vmem [resolvable:$true] %s27_s13  ;;  %s18_s15 = int_to_ptr.vmem [resolvable:$true] %s17_s15 }
   0x4   :  { %s109_s18 = scalar_lea.hbm %s264_s1, 128 }
   0x5   :  { %p110_p0 = scmp.ne.s32.totalorder %s264_s1, %s109_s18  ;;  %p113_p1 = scmp.lt.u32.totalorder %s109_s18, %s264_s1 }
   0x7   :  { %p115_p2 = pnand %p113_p1, %p110_p0 }
   0x9   :  { %118 = shalt.err (!%p115_p2)
}
   0xa   :  { %s119_s23 = scalar_lea.vmem %s28_s13, 128  ;;  %p124_p4 = scmp.lt.s32.totalorder %s28_s13, %s28_s13 }
   0xb   :  { %p120_p3 = scmp.ne.s32.totalorder %s28_s13, %s119_s23  ;;  %p125_p5 = scmp.lt.s32.totalorder %s119_s23, %s119_s23 }
   0xd   :  { %p126_p6 = por %p125_p5, %p124_p4 }
   0xf   :  { %p127_p7 = pnand %p126_p6, %p120_p3 }
  0x11   :  { %130 = shalt.err (!%p127_p7)
}
  0x12   :  { %30 = dma.hbm_to_vmem [thread:$0]  %s264_s1, 128, %s28_s13, [#allocation7]  }
  0x13   :  { %s131_s28 = scalar_lea.hbm %s263_s0, 16 }
  0x14   :  { %p132_p8 = scmp.ne.s32.totalorder %s263_s0, %s131_s28  ;;  %p135_p9 = scmp.lt.u32.totalorder %s131_s28, %s263_s0 }
  0x16   :  { %p137_p10 = pnand %p135_p9, %p132_p8 }
  0x18   :  { %140 = shalt.err (!%p137_p10)
}
  0x19   :  { %s141_s6 = scalar_lea.vmem %s18_s15, 16  ;;  %s145_s7 = scalar_lea.vmem %s18_s15, 32 }
  0x1a   :  { %p142_p11 = scmp.ne.s32.totalorder %s18_s15, %s141_s6  ;;  %p146_p12 = scmp.lt.s32.totalorder %s18_s15, %s18_s15 }
  0x1b   :  { %p147_p13 = scmp.lt.s32.totalorder %s145_s7, %s141_s6 }
  0x1d   :  { %p148_p0 = por %p147_p13, %p146_p12 }
  0x1f   :  { %p149_p1 = pnand %p148_p0, %p142_p11 }
  0x21   :  { %152 = shalt.err (!%p149_p1)
}
  0x22   :  { %20 = dma.hbm_to_vmem [thread:$0]  %s263_s0, 16, %s18_s15, [#allocation4]  }
  0x23   :  { %s193_s9 = smov [#allocation8]   ;;  %s153_s13 = scalar_lea.hbm %s265_s2, 128 }
  0x24   :  { %s37_s10 = sshll.u32 %s193_s9, 4  ;;  %p154_p2 = scmp.ne.s32.totalorder %s265_s2, %s153_s13  ;;  %s38_s10 = int_to_ptr.vmem [resolvable:$true] %s37_s10 }
  0x25   :  { %p157_p3 = scmp.lt.u32.totalorder %s153_s13, %s265_s2 }
  0x27   :  { %p159_p4 = pnand %p157_p3, %p154_p2 }
  0x29   :  { %162 = shalt.err (!%p159_p4)
}
  0x2a   :  { %s163_s19 = scalar_lea.vmem %s38_s10, 128  ;;  %p168_p6 = scmp.lt.s32.totalorder %s38_s10, %s38_s10 }
  0x2b   :  { %p164_p5 = scmp.ne.s32.totalorder %s38_s10, %s163_s19  ;;  %p169_p7 = scmp.lt.s32.totalorder %s163_s19, %s163_s19 }
  0x2d   :  { %p170_p8 = por %p169_p7, %p168_p6 }
  0x2f   :  { %p171_p9 = pnand %p170_p8, %p164_p5 }
  0x31   :  { %174 = shalt.err (!%p171_p9)
}
  0x32   :  { %40 = dma.hbm_to_vmem [thread:$0]  %s265_s2, 128, %s38_s10, [#allocation7]  }
  0x33   :  { %185 = dma.done.wait [#allocation4], 16  }
  0x34   :  { %186 = vsyncadd [#allocation4], 4294967280 }
  0x35   :  { %187 = dma.done.wait [#allocation7], 256  }
  0x36   :  { %188 = vsyncadd [#allocation7], 4294967040  ;;  %v56_v0 = vld [vmem:[#allocation6] sm:$0xff]  ;;  %v57_v1 = vld [vmem:[#allocation8] sm:$0xff]  ;;  %s175_s22 = scalar_lea.hbm %s266_s3, 16 }
  0x37   :  { %v58_v2 = vsub.f32 %v56_v0, %v57_v1  ;;  %v102_v3 = vld [vmem:[#allocation3] ss:$0 sm:$0xff]  ;;  %p176_p10 = scmp.ne.s32.totalorder %s266_s3, %s175_s22  ;;  %p179_p11 = scmp.lt.u32.totalorder %s175_s22, %s266_s3 }
  0x39   :  { %v59_v4 = vand.u32 2147483647, %v58_v2  ;;  %p181_p12 = pnand %p179_p11, %p176_p10 }
  0x3b   :  { %v68_v5 = vmul.f32 %v102_v3, %v59_v4 }
  0x3d   :  { %69 = vadd.xlane.f32.xlu0 %v68_v5 }
  0xca   :  { %v70_v6 = vpop.xlane.xlu0 %69 }
  0xcb   :  { %v71_v7 = vrot.slane %v70_v6, 4 }
  0xcd   :  { %v72_v8 = vadd.f32 %v71_v7, %v70_v6 }
  0xcf   :  { %v73_v9 = vrot.slane %v72_v8, 2 }
  0xd1   :  { %v74_v10 = vadd.f32 %v73_v9, %v72_v8 }
  0xd3   :  { %v75_v11 = vrot.slane %v74_v10, 1 }
  0xd5   :  { %v76_v12 = vadd.f32 %v75_v11, %v74_v10 }
  0xd7   :  { %103 = vpush %v76_v12 }
 0x108   :  { %s104_s2 = spop %103 }
 0x109   :  { %86 = sst [smem:[#allocation9]] %s104_s2 }
 0x10a   :  { %184 = shalt.err (!%p181_p12)
}
 0x10b   :  { %s194_s27 = smov [#allocation9]  }
 0x10c   :  { %94 = dma.smem_to_hbm %s194_s27, 16, %s266_s3, [#allocation5]  }
 0x10d   :  { %189 = dma.done.wait [#allocation5], 16  }
 0x10e   :  { %190 = vsyncadd [#allocation5], 4294967280 }
 0x10f   :  { %98 = sfence }
 0x110   :  { %99 = vsyncpa [#allocation4], 1 }
 0x111   :  { %100 = vsyncpa [#allocation7], 1 }
 0x112   :  { %101 = vsyncpa [#allocation5], 1 }

</bundles_post_ra>
